<compile_context>
chip_gen: v7x
topology: tpu7x:2x2x1
jax: 0.10.0
libtpu: 0.0.40
codegen_flags: <defaults>
</compile_context>

<pallas_src>
import jax
import jax.numpy as jnp
from jax.experimental import pallas as pl
from jax.experimental.pallas import tpu as pltpu


def _round_up(x, m):
    return ((x + m - 1) // m) * m


def _selectivenet_kernel(
    audio_ref, text_ref,            # [TB, A], [TB, T]     (compute dtype)
    w_t_ref, w_a_ref, b_cat_ref,    # [T, 2C], [A, 2C], [1, 2C]
    w_s1_ref, b_s1_ref,             # [2C, 2C], [1, 2C]
    w_s2_ref, b_s2_ref,             # [1, 2C], [1, 1]
    proj_ref, score_ref,            # [TB, 2C], [TB, 1]    (f32 outputs)
):
    # Projections (dropout == identity in eval mode). Projector weights are
    # column-padded: w_t_pad = [w_st | 0], w_a_pad = [0 | w_sa], so the two MXU
    # results accumulate directly into the cat((sel_t, sel_a), dim=1) layout:
    # one lane-dense (TB, 2C) slab, no in-kernel concat, no W1 split.
    cat = (
        jnp.dot(text_ref[...], w_t_ref[...], preferred_element_type=jnp.float32)
        + jnp.dot(audio_ref[...], w_a_ref[...], preferred_element_type=jnp.float32)
        + b_cat_ref[...]
    )

    # Selector: Linear(2C,2C) -> ReLU -> Linear(2C,1) -> Sigmoid.
    h = jnp.dot(cat, w_s1_ref[...], preferred_element_type=jnp.float32) + b_s1_ref[...]
    h = jnp.maximum(h, 0.0)

    # N=1 head: VPU multiply + lane reduction (an MXU matmul would use <1% of
    # the array). Sigmoid: exp on the EUP, exact reciprocal for the divide.
    logit = jnp.sum(h * w_s2_ref[...], axis=-1, keepdims=True) + b_s2_ref[...]
    score_ref[...] = pl.reciprocal(1.0 + jnp.exp(-logit), approx=False)

    # Packed projection slab: cols [0:C] = sel_text, cols [C:2C] = sel_audio.
    # Single unmasked 128-lane store, single output DMA stream.
    proj_ref[...] = cat


def selectivenet_forward(audio_fea, text_fea, params, *,
                         max_block_b=4096,
                         compute_dtype=jnp.bfloat16,
                         min_grid_tiles=2):
    B, A = audio_fea.shape
    _, T = text_fea.shape
    C = params["w_sa"].shape[1]
    C2 = 2 * C
    f32 = jnp.float32

    # ---- batch tile size --------------------------------------------------
    TB = min(B, max_block_b)
    # Ensure >= min_grid_tiles grid steps (8-row aligned) so v7x's second
    # TensorCore gets work; one extra step costs ~0.35 us on 1-TC chips.
    if min_grid_tiles > 1 and B >= 8 * min_grid_tiles and pl.cdiv(B, TB) < min_grid_tiles:
        TB = _round_up(pl.cdiv(B, min_grid_tiles), 8)
    grid = (pl.cdiv(B, TB),)
    # NOTE: when B % TB != 0 the last tile computes on padded/garbage rows;
    # output stores are masked so results stay correct -- do not add cross-row
    # reductions to the kernel without revisiting this.

    # ---- weight / bias preparation ----------------------------------------
    w_st = params["w_st"].astype(f32)
    w_sa = params["w_sa"].astype(f32)
    # Column-padded projector weights (see kernel): bf16 halves their (tiny)
    # DMA and lets the MXU take bf16 operands; accumulation stays f32.
    w_t_pad = jnp.concatenate([w_st, jnp.zeros((T, C), f32)], axis=1).astype(compute_dtype)
    w_a_pad = jnp.concatenate([jnp.zeros((A, C), f32), w_sa], axis=1).astype(compute_dtype)
    b_cat = jnp.concatenate([params["b_st"], params["b_sa"]]).reshape(1, C2).astype(f32)

    # Selector weights stay f32 (they multiply the f32 accumulator; 64 KB total).
    w_s1 = params["w_s1"].astype(f32)
    b_s1 = params["b_s1"].reshape(1, C2).astype(f32)
    w_s2 = params["w_s2"].reshape(1, C2).astype(f32)   # (1, 2C) row for the VPU reduce
    b_s2 = params["b_s2"].reshape(1, 1).astype(f32)

    args = (
        audio_fea.astype(compute_dtype),
        text_fea.astype(compute_dtype),
        w_t_pad, w_a_pad, b_cat, w_s1, b_s1, w_s2, b_s2,
    )

    def batch_spec(feat):
        return pl.BlockSpec((TB, feat), lambda i: (i, 0))

    def const_spec(x):
        return pl.BlockSpec(x.shape, lambda i: (0, 0))

    in_specs = [batch_spec(A), batch_spec(T)] + [const_spec(a) for a in args[2:]]

    out_shapes = (
        jax.ShapeDtypeStruct((B, C2), f32),   # packed [sel_text | sel_audio]
        jax.ShapeDtypeStruct((B, 1), f32),    # sel_score
    )
    out_specs = (
        pl.BlockSpec((TB, C2), lambda i: (i, 0)),
        pl.BlockSpec((TB, 1), lambda i: (i, 0)),
    )

    proj, score = pl.pallas_call(
        _selectivenet_kernel,
        out_shape=out_shapes,
        grid=grid,
        in_specs=in_specs,
        out_specs=out_specs,
        compiler_params=pltpu.CompilerParams(
            dimension_semantics=("parallel",),
        ),
    )(*args)

    sel_t = proj[:, :C]
    sel_a = proj[:, C:]
    # aux_prj_* are bit-identical to sel_prj_* in the reference forward() (eval
    # mode + sel projectors reused), so they are aliased instead of recomputed.
    return sel_a, sel_t, sel_a, sel_t, score


def init_params(key, audio_dim, text_dim, com_dim):
    """Deterministic PyTorch-Linear-style init (uniform +-1/sqrt(fan_in))."""
    def linear(k, fan_in, fan_out):
        kw, kb = jax.random.split(k)
        bound = 1.0 / jnp.sqrt(fan_in)
        w = jax.random.uniform(kw, (fan_in, fan_out), jnp.float32, -bound, bound)
        b = jax.random.uniform(kb, (fan_out,), jnp.float32, -bound, bound)
        return w, b

    ks = jax.random.split(key, 6)
    w_sa, b_sa = linear(ks[0], audio_dim, com_dim)     # sel_audio_projector
    w_st, b_st = linear(ks[1], text_dim, com_dim)      # sel_text_projector
    # aux projectors exist in __init__ but are unused in forward(); init anyway.
    w_aa, b_aa = linear(ks[2], audio_dim, com_dim)
    w_at, b_at = linear(ks[3], text_dim, com_dim)
    w_s1, b_s1 = linear(ks[4], 2 * com_dim, 2 * com_dim)
    w_s2, b_s2 = linear(ks[5], 2 * com_dim, 1)
    return dict(w_sa=w_sa, b_sa=b_sa, w_st=w_st, b_st=b_st,
                w_aa=w_aa, b_aa=b_aa, w_at=w_at, b_at=b_at,
                w_s1=w_s1, b_s1=b_s1, w_s2=w_s2, b_s2=b_s2)


def reference_forward(audio_fea, text_fea, params):
    """Pure-JAX reference matching the PyTorch forward (eval mode).

    HIGHEST matmul precision so the fp32 comparison is apples-to-apples with
    the kernel's fp32 MXU accumulation.
    """
    hi = jax.lax.Precision.HIGHEST
    sel_a = jnp.dot(audio_fea, params["w_sa"], precision=hi) + params["b_sa"]
    sel_t = jnp.dot(text_fea, params["w_st"], precision=hi) + params["b_st"]
    aux_a = jnp.dot(audio_fea, params["w_sa"], precision=hi) + params["b_sa"]
    aux_t = jnp.dot(text_fea, params["w_st"], precision=hi) + params["b_st"]
    cat = jnp.concatenate([sel_t, sel_a], axis=1)
    h = jnp.maximum(jnp.dot(cat, params["w_s1"], precision=hi) + params["b_s1"], 0.0)
    score = jax.nn.sigmoid(jnp.dot(h, params["w_s2"], precision=hi) + params["b_s2"])
    return sel_a, sel_t, aux_a, aux_t, score


if __name__ == "__main__":
    B, AUDIO_DIM, TEXT_DIM, COM_DIM = 16, 32, 48, 64

    key = jax.random.PRNGKey(0)
    k_a, k_t, k_p = jax.random.split(key, 3)
    audio_fea = jax.random.normal(k_a, (B, AUDIO_DIM), jnp.float32)
    text_fea = jax.random.normal(k_t, (B, TEXT_DIM), jnp.float32)
    params = init_params(k_p, AUDIO_DIM, TEXT_DIM, COM_DIM)

    refs = reference_forward(audio_fea, text_fea, params)

    # Exact-dtype path (f32 I/O) -- tight correctness check.
    outs_f32 = jax.block_until_ready(
        selectivenet_forward(audio_fea, text_fea, params, compute_dtype=jnp.float32))
    for o, r in zip(outs_f32, refs):
        assert o.shape == r.shape
        assert jnp.max(jnp.abs(o - r)) < 2e-4

    # Default bf16-input path (f32 accumulation / f32 outputs): ~2x less input
    # DMA at the cost of ~1e-2 absolute error -> looser tolerance.
    outs_bf16 = jax.block_until_ready(
        selectivenet_forward(audio_fea, text_fea, params))
    for o, r in zip(outs_bf16, refs):
        assert o.shape == r.shape
        assert jnp.max(jnp.abs(o - r)) < 1e-1

    print("KERNEL_OK")
</pallas_src>

<mosaic_0001>
module attributes {stable_mosaic.version = 11 : i64} {
  func.func @_selectivenet_kernel(%arg0: i32, %arg1: memref<8x32xf32, #tpu.memory_space<vmem>>, %arg2: memref<8x48xf32, #tpu.memory_space<vmem>>, %arg3: memref<48x128xf32, #tpu.memory_space<vmem>>, %arg4: memref<32x128xf32, #tpu.memory_space<vmem>>, %arg5: memref<1x128xf32, #tpu.memory_space<vmem>>, %arg6: memref<128x128xf32, #tpu.memory_space<vmem>>, %arg7: memref<1x128xf32, #tpu.memory_space<vmem>>, %arg8: memref<1x128xf32, #tpu.memory_space<vmem>>, %arg9: memref<1x1xf32, #tpu.memory_space<vmem>>, %arg10: memref<8x128xf32, #tpu.memory_space<vmem>>, %arg11: memref<8x1xf32, #tpu.memory_space<vmem>>) attributes {dimension_semantics = [#tpu.dimension_semantics<parallel>], iteration_bounds = array<i64: 2>, scalar_prefetch = 0 : i64, scratch_operands = 0 : i64, tpu.core_type = #tpu.core_type<tc>, window_params = [{transform_indices = @transform_0, window_bounds = array<i64: 8, 32>}, {transform_indices = @transform_1, window_bounds = array<i64: 8, 48>}, {pipeline_mode = #tpu.pipeline_mode<synchronous>, transform_indices = @transform_2, window_bounds = array<i64: 48, 128>}, {pipeline_mode = #tpu.pipeline_mode<synchronous>, transform_indices = @transform_3, window_bounds = array<i64: 32, 128>}, {pipeline_mode = #tpu.pipeline_mode<synchronous>, transform_indices = @transform_4, window_bounds = array<i64: 1, 128>}, {pipeline_mode = #tpu.pipeline_mode<synchronous>, transform_indices = @transform_5, window_bounds = array<i64: 128, 128>}, {pipeline_mode = #tpu.pipeline_mode<synchronous>, transform_indices = @transform_6, window_bounds = array<i64: 1, 128>}, {pipeline_mode = #tpu.pipeline_mode<synchronous>, transform_indices = @transform_7, window_bounds = array<i64: 1, 128>}, {pipeline_mode = #tpu.pipeline_mode<synchronous>, transform_indices = @transform_8, window_bounds = array<i64: 1, 1>}, {transform_indices = @transform_9, window_bounds = array<i64: 8, 128>}, {transform_indices = @transform_10, window_bounds = array<i64: 8, 1>}]} {
    %c0 = arith.constant 0 : index
    %c0_0 = arith.constant 0 : index
    %0 = vector.load %arg2[%c0, %c0_0] : memref<8x48xf32, #tpu.memory_space<vmem>>, vector<8x48xf32>
    %c0_1 = arith.constant 0 : index
    %c0_2 = arith.constant 0 : index
    %1 = vector.load %arg3[%c0_1, %c0_2] : memref<48x128xf32, #tpu.memory_space<vmem>>, vector<48x128xf32>
    %cst = arith.constant dense<0.000000e+00> : vector<8x128xf32>
    %2 = tpu.matmul %0, %1, %cst {dimension_numbers = #tpu.dot_dimension_numbers<[1], [0], [0], [1], [0, 0, 1, 1], [], []>} : vector<8x48xf32>, vector<48x128xf32>, vector<8x128xf32> -> vector<8x128xf32>
    %c0_3 = arith.constant 0 : index
    %c0_4 = arith.constant 0 : index
    %3 = vector.load %arg1[%c0_3, %c0_4] : memref<8x32xf32, #tpu.memory_space<vmem>>, vector<8x32xf32>
    %c0_5 = arith.constant 0 : index
    %c0_6 = arith.constant 0 : index
    %4 = vector.load %arg4[%c0_5, %c0_6] : memref<32x128xf32, #tpu.memory_space<vmem>>, vector<32x128xf32>
    %cst_7 = arith.constant dense<0.000000e+00> : vector<8x128xf32>
    %5 = tpu.matmul %3, %4, %cst_7 {dimension_numbers = #tpu.dot_dimension_numbers<[1], [0], [0], [1], [0, 0, 1, 1], [], []>} : vector<8x32xf32>, vector<32x128xf32>, vector<8x128xf32> -> vector<8x128xf32>
    %6 = arith.addf %2, %5 : vector<8x128xf32>
    %c0_8 = arith.constant 0 : index
    %c0_9 = arith.constant 0 : index
    %7 = vector.load %arg5[%c0_8, %c0_9] : memref<1x128xf32, #tpu.memory_space<vmem>>, vector<1x128xf32>
    %8 = vector.broadcast %7 : vector<1x128xf32> to vector<8x128xf32>
    %9 = arith.addf %6, %8 : vector<8x128xf32>
    %c0_10 = arith.constant 0 : index
    %c0_11 = arith.constant 0 : index
    %10 = vector.load %arg6[%c0_10, %c0_11] : memref<128x128xf32, #tpu.memory_space<vmem>>, vector<128x128xf32>
    %cst_12 = arith.constant dense<0.000000e+00> : vector<8x128xf32>
    %11 = tpu.matmul %9, %10, %cst_12 {dimension_numbers = #tpu.dot_dimension_numbers<[1], [0], [0], [1], [0, 0, 1, 1], [], []>} : vector<8x128xf32>, vector<128x128xf32>, vector<8x128xf32> -> vector<8x128xf32>
    %c0_13 = arith.constant 0 : index
    %c0_14 = arith.constant 0 : index
    %12 = vector.load %arg7[%c0_13, %c0_14] : memref<1x128xf32, #tpu.memory_space<vmem>>, vector<1x128xf32>
    %13 = vector.broadcast %12 : vector<1x128xf32> to vector<8x128xf32>
    %14 = arith.addf %11, %13 : vector<8x128xf32>
    %cst_15 = arith.constant 0.000000e+00 : f32
    %15 = vector.broadcast %cst_15 : f32 to vector<8x128xf32>
    %16 = arith.maximumf %14, %15 : vector<8x128xf32>
    %c0_16 = arith.constant 0 : index
    %c0_17 = arith.constant 0 : index
    %17 = vector.load %arg8[%c0_16, %c0_17] : memref<1x128xf32, #tpu.memory_space<vmem>>, vector<1x128xf32>
    %18 = vector.broadcast %17 : vector<1x128xf32> to vector<8x128xf32>
    %19 = arith.mulf %16, %18 : vector<8x128xf32>
    %cst_18 = arith.constant dense<0.000000e+00> : vector<8xf32>
    %20 = vector.multi_reduction <add>, %19, %cst_18 [1] : vector<8x128xf32> to vector<8xf32>
    %21 = vector.shape_cast %20 : vector<8xf32> to vector<8x1xf32>
    %c0_19 = arith.constant 0 : index
    %c0_20 = arith.constant 0 : index
    %22 = vector.load %arg9[%c0_19, %c0_20] : memref<1x1xf32, #tpu.memory_space<vmem>>, vector<1x1xf32>
    %23 = vector.broadcast %22 : vector<1x1xf32> to vector<8x1xf32>
    %24 = arith.addf %21, %23 : vector<8x1xf32>
    %cst_21 = arith.constant 0.000000e+00 : f32
    %25 = vector.broadcast %cst_21 : f32 to vector<8x1xf32>
    %26 = arith.subf %25, %24 : vector<8x1xf32>
    %27 = math.exp %26 : vector<8x1xf32>
    %cst_22 = arith.constant 1.000000e+00 : f32
    %28 = vector.broadcast %cst_22 : f32 to vector<8x1xf32>
    %29 = arith.addf %28, %27 : vector<8x1xf32>
    %30 = tpu.reciprocal %29 : vector<8x1xf32> -> vector<8x1xf32>
    %c0_23 = arith.constant 0 : index
    %c0_24 = arith.constant 0 : index
    %31 = vector.load %arg11[%c0_23, %c0_24] : memref<8x1xf32, #tpu.memory_space<vmem>>, vector<8x1xf32>
    tpu.vector_store %arg11[%c0_23, %c0_24], %30 {strides = array<i32>} : memref<8x1xf32, #tpu.memory_space<vmem>>, vector<8x1xf32>,
    %c0_25 = arith.constant 0 : index
    %c0_26 = arith.constant 0 : index
    %32 = vector.load %arg10[%c0_25, %c0_26] : memref<8x128xf32, #tpu.memory_space<vmem>>, vector<8x128xf32>
    tpu.vector_store %arg10[%c0_25, %c0_26], %9 {strides = array<i32>} : memref<8x128xf32, #tpu.memory_space<vmem>>, vector<8x128xf32>,
    return
  }
  func.func @transform_0(%arg0: i32) -> (i32, i32) {
    %c0_i32 = arith.constant 0 : i32
    %c0_i32_0 = arith.constant 0 : i32
    return %arg0, %c0_i32 : i32, i32
  }
  func.func @transform_1(%arg0: i32) -> (i32, i32) {
    %c0_i32 = arith.constant 0 : i32
    %c0_i32_0 = arith.constant 0 : i32
    return %arg0, %c0_i32 : i32, i32
  }
  func.func @transform_2(%arg0: i32) -> (i32, i32) {
    %c0_i32 = arith.constant 0 : i32
    %c0_i32_0 = arith.constant 0 : i32
    %c0_i32_1 = arith.constant 0 : i32
    return %c0_i32, %c0_i32_0 : i32, i32
  }
  func.func @transform_3(%arg0: i32) -> (i32, i32) {
    %c0_i32 = arith.constant 0 : i32
    %c0_i32_0 = arith.constant 0 : i32
    %c0_i32_1 = arith.constant 0 : i32
    return %c0_i32, %c0_i32_0 : i32, i32
  }
  func.func @transform_4(%arg0: i32) -> (i32, i32) {
    %c0_i32 = arith.constant 0 : i32
    %c0_i32_0 = arith.constant 0 : i32
    %c0_i32_1 = arith.constant 0 : i32
    return %c0_i32, %c0_i32_0 : i32, i32
  }
  func.func @transform_5(%arg0: i32) -> (i32, i32) {
    %c0_i32 = arith.constant 0 : i32
    %c0_i32_0 = arith.constant 0 : i32
    %c0_i32_1 = arith.constant 0 : i32
    return %c0_i32, %c0_i32_0 : i32, i32
  }
  func.func @transform_6(%arg0: i32) -> (i32, i32) {
    %c0_i32 = arith.constant 0 : i32
    %c0_i32_0 = arith.constant 0 : i32
    %c0_i32_1 = arith.constant 0 : i32
    return %c0_i32, %c0_i32_0 : i32, i32
  }
  func.func @transform_7(%arg0: i32) -> (i32, i32) {
    %c0_i32 = arith.constant 0 : i32
    %c0_i32_0 = arith.constant 0 : i32
    %c0_i32_1 = arith.constant 0 : i32
    return %c0_i32, %c0_i32_0 : i32, i32
  }
  func.func @transform_8(%arg0: i32) -> (i32, i32) {
    %c0_i32 = arith.constant 0 : i32
    %c0_i32_0 = arith.constant 0 : i32
    %c0_i32_1 = arith.constant 0 : i32
    return %c0_i32, %c0_i32_0 : i32, i32
  }
  func.func @transform_9(%arg0: i32) -> (i32, i32) {
    %c0_i32 = arith.constant 0 : i32
    %c0_i32_0 = arith.constant 0 : i32
    return %arg0, %c0_i32 : i32, i32
  }
  func.func @transform_10(%arg0: i32) -> (i32, i32) {
    %c0_i32 = arith.constant 0 : i32
    %c0_i32_0 = arith.constant 0 : i32
    return %arg0, %c0_i32 : i32, i32
  }
}

</mosaic_0001>

<bundles_post_ra>
// kernel: tpu_custom_call.1
= control target key start
LH: loop header
LB: loop body
LE: loop exit
PB: predicated region body
PF: predicated region fallthrough
CT: control target
= control target key end

     0   :  { %s1793_s0 = inlined_call_operand.hbm [shape: f32[16,32], index: 0, kind: input, shape index: {}]   ;;  %s1794_s1 = inlined_call_operand.hbm [shape: f32[16,48], index: 1, kind: input, shape index: {}]   ;;  %s1795_s2 = inlined_call_operand.hbm [shape: f32[48,128], index: 2, kind: input, shape index: {}]   ;;  %s1796_s3 = inlined_call_operand.hbm [shape: f32[32,128], index: 3, kind: input, shape index: {}]   ;;  %s1797_s4 = inlined_call_operand.vmem [shape: f32[1,128], index: 4, kind: input, shape index: {}]   ;;  %s1798_s5 = inlined_call_operand.hbm [shape: f32[128,128], index: 5, kind: input, shape index: {}]   ;;  %s1799_s6 = inlined_call_operand.vmem [shape: f32[1,128], index: 6, kind: input, shape index: {}]   ;;  %s1800_s7 = inlined_call_operand.vmem [shape: f32[1,128], index: 7, kind: input, shape index: {}]   ;;  %s1801_s8 = inlined_call_operand.<no memory space> [shape: f32[1,1], index: 8, kind: input, shape index: {}]   ;;  %s1802_s9 = inlined_call_operand.hbm [shape: f32[16,128], index: 9, kind: output, shape index: {0}]   ;;  %s1803_s10 = inlined_call_operand.vmem [shape: f32[16,1], index: 10, kind: output, shape index: {1}]  }
   0x1   :  { %1810 = sst [smem:[#allocation20_spill]] %s1795_s2  ;;  %v16_v0 = vstv %s1801_s8 }
   0x2   :  { %1811 = sst [smem:[#allocation21_spill]] %s1796_s3  ;;  %17 = vst [vmem:[#allocation2] sm:$0x1] %v16_v0 }
   0x3   :  { %1812 = sst [smem:[#allocation22_spill]] %s1798_s5 }
   0x4   :  { %1813 = sst [smem:[#allocation23_spill]] %s1803_s10 }
   0x5   :  { %18 = vsyncpa [#allocation4], 0 }
   0x6   :  { %20 = vsyncpa [#allocation4 + $0x1], 0 }
   0x7   :  { %21 = vsyncpa [#allocation7], 0 }
   0x8   :  { %23 = vsyncpa [#allocation7 + $0x1], 0 }
   0x9   :  { %24 = vsyncpa [#allocation10], 0 }
   0xa   :  { %25 = vsyncpa [#allocation5], 0 }
   0xb   :  { %27 = vsyncpa [#allocation5 + $0x1], 0  ;;  %s1463_s15 = smov 0   ;;  %s1465_s16 = smov 0  }
   0xc   :  { %s1467_s17 = smov 0   ;;  %s1469_s18 = smov 0  }
   0xd LB: > { %1814 = sst [smem:[#allocation18_spill]] %s1380_s15  ;;  %s1484_s8 = sadd.s32 4294967295, %s1392_s18   ;;  %s1392_s18 = sphi %s1469_s18, %s1842_s18   ;;  %s1388_s17 = sphi %s1467_s17, %s1841_s17   ;;  %s1384_s16 = sphi %s1465_s16, %s1840_s16   ;;  %s1380_s15 = sphi %s1463_s15, %s1839_s15  }
   0xe   : > { %s922_s19 = sadd.s32 4294967294, %s1392_s18   ;;  %p53_p0 = scmp.ne.s32.totalorder %s1384_s16, %s1380_s15 }
   0xf   : > { %p1804_p1 = scmp.eq.s32.totalorder %s1484_s8, 0  ;;  %p256_p3 = scmp.eq.s32.totalorder %s922_s19, 1 }
  0x10   : > { %p923_p5 = scmp.ge.s32.totalorder %s1392_s18, 1  ;;  %p289_p7 = scmp.lt.s32.totalorder %s1392_s18, 3 }
  0x11   : > { %p1493_p4 = por %p1804_p1, %p53_p0  ;;  %p1498_p6 = por %p256_p3, %p53_p0 }
  0x12   : > { %p1503_p8 = pnand %p923_p5, %p289_p7  ;;  %s1394_s23 = smov [#allocation8]  }
  0x13   : > { %s1815_s20 = scalar_select %p1493_p4, 1, 0 }
  0x14   : > { %s1816_s21 = scalar_select %p1498_p6, 1, 0 }
  0x15   : > { %s1818_s22 = scalar_select %p1503_p8, 1, 0 }
  0x16   : > { %1817 = sst [smem:[#allocation19_spill]] %s1816_s21  ;;  %s301_s24 = sshll.u32 %s1394_s23, 4  ;;  %s1507_s24 = int_to_ptr.vmem [resolvable:$true] %s301_s24 }
  0x17   : > { %p1097_p9 = pneg %p1503_p8  ;;  %s1395_s26 = smov [#allocation9]  }
  0x18   : > { %s314_s27 = sshll.u32 %s1395_s26, 4  ;;  %s1396_s28 = smov [#allocation11]   ;;  %s1518_s27 = int_to_ptr.vmem [resolvable:$true] %s314_s27 }
  0x19   : > { %p1514_p11 = pnand %p1097_p9, %p1804_p1  ;;  %s1520_s29 = sshll.u32 %s1396_s28, 4  ;;  %s331_s29 = int_to_ptr.vmem [resolvable:$true] %s1520_s29 }
  0x1a   : > { %s1820_s2 = sld [smem:[#allocation20_spill]] }
  0x1b   : > { %p1530_p13 = pneg %p1514_p11 }
  0x20   : > { %s1170_s12 = scalar_lea.hbm %s1820_s2, 768 }
  0x21   : > { %p1171_p12 = scmp.ne.s32.totalorder %s1820_s2, %s1170_s12  ;;  %p1177_p5 = scmp.lt.u32.totalorder %s1170_s12, %s1820_s2 }
  0x23   : > { %p1173_p0 = pnand %p1530_p13, %p1171_p12 }
  0x25   : > { %p1174_p3 = pneg %p1173_p0 }
  0x27   : > { %p1179_p7 = pnand %p1177_p5, %p1174_p3 }
  0x29   : > { %1182 = shalt.err (!%p1179_p7)
}
  0x2a   : > { %s1183_s28 = scalar_lea.vmem %s1507_s24, 768  ;;  %p1191_p2 = scmp.lt.s32.totalorder %s1507_s24, %s1507_s24 }
  0x2b   : > { %p1184_p9 = scmp.ne.s32.totalorder %s1507_s24, %s1183_s28  ;;  %p1192_p6 = scmp.lt.s32.totalorder %s1183_s28, %s1183_s28 }
  0x2d   : > { %p1186_p10 = pnand %p1184_p9, %p1530_p13  ;;  %p1193_p12 = por %p1192_p6, %p1191_p2 }
  0x2f   : > { %p1187_p1 = pneg %p1186_p10 }
  0x31   : > { %p1194_p0 = pnand %p1193_p12, %p1187_p1 }
  0x33   : > { %1197 = shalt.err (!%p1194_p0)
}
  0x34   : > { %s1397_s30 = smov 128   ;;  %s1398_s11 = smov 8  }
  0x35   : > { %1100 = dma.hbm_to_vmem [thread:$0]  (!%p1514_p11), %s1820_s2, 768, %s1507_s24, [#allocation7], %s1397_s30, %s1397_s30, %s1398_s11  }
  0x36   : > { %s1822_s3 = sld [smem:[#allocation21_spill]] }
  0x3c   : > { %s1198_s26 = scalar_lea.hbm %s1822_s3, 512 }
  0x3d   : > { %p1199_p1 = scmp.ne.s32.totalorder %s1822_s3, %s1198_s26  ;;  %p1205_p10 = scmp.lt.u32.totalorder %s1198_s26, %s1822_s3 }
  0x3f   : > { %p1201_p2 = pnand %p1199_p1, %p1530_p13 }
  0x41   : > { %p1202_p6 = pneg %p1201_p2 }
  0x43   : > { %p1207_p3 = pnand %p1205_p10, %p1202_p6 }
  0x45   : > { %1210 = shalt.err (!%p1207_p3)
}
  0x46   : > { %s1211_s24 = scalar_lea.vmem %s1518_s27, 512  ;;  %p1219_p12 = scmp.lt.s32.totalorder %s1518_s27, %s1518_s27 }
  0x47   : > { %p1212_p5 = scmp.ne.s32.totalorder %s1518_s27, %s1211_s24  ;;  %p1220_p0 = scmp.lt.s32.totalorder %s1211_s24, %s1211_s24 }
  0x49   : > { %p1214_p7 = pnand %p1212_p5, %p1530_p13  ;;  %p1221_p1 = por %p1220_p0, %p1219_p12 }
  0x4b   : > { %p1215_p9 = pneg %p1214_p7 }
  0x4d   : > { %p1222_p2 = pnand %p1221_p1, %p1215_p9 }
  0x4f   : > { %1225 = shalt.err (!%p1222_p2)
}
  0x50   : > { %1103 = dma.hbm_to_vmem [thread:$0]  (!%p1514_p11), %s1822_s3, 512, %s1518_s27, [#allocation10], %s1397_s30, %s1397_s30, %s1398_s11  }
  0x51   : > { %s1823_s5 = sld [smem:[#allocation22_spill]] }
  0x57   : > { %s1226_s13 = scalar_lea.hbm %s1823_s5, 2048 }
  0x58   : > { %p1227_p6 = scmp.ne.s32.totalorder %s1823_s5, %s1226_s13  ;;  %p1233_p5 = scmp.lt.u32.totalorder %s1226_s13, %s1823_s5 }
  0x5a   : > { %p1229_p10 = pnand %p1227_p6, %p1530_p13 }
  0x5c   : > { %p1230_p3 = pneg %p1229_p10 }
  0x5e   : > { %p1235_p7 = pnand %p1233_p5, %p1230_p3 }
  0x60   : > { %1238 = shalt.err (!%p1235_p7)
}
  0x61   : > { %s1239_s24 = scalar_lea.vmem %s331_s29, 2048  ;;  %p1247_p1 = scmp.lt.s32.totalorder %s331_s29, %s331_s29 }
  0x62   : > { %p1240_p9 = scmp.ne.s32.totalorder %s331_s29, %s1239_s24  ;;  %p1248_p2 = scmp.lt.s32.totalorder %s1239_s24, %s1239_s24 }
  0x64   : > { %p1242_p12 = pnand %p1240_p9, %p1530_p13  ;;  %p1249_p4 = por %p1248_p2, %p1247_p1 }
  0x66   : > { %p1243_p0 = pneg %p1242_p12 }
  0x68   : > { %p1250_p8 = pnand %p1249_p4, %p1243_p0 }
  0x6a   : > { %1253 = shalt.err (!%p1250_p8)
}
  0x6b   : > { %1106 = dma.hbm_to_vmem [thread:$0]  (!%p1514_p11), %s1823_s5, 2048, %s331_s29, [#allocation10], %s1397_s30, %s1397_s30, %s1398_s11  }
  0x6c   : > { %s1603_s19 = sadd.s32 1, %s1392_s18   ;;  %s40_s15 = sadd.s32 1, %s1388_s17 }
  0x6d   : > { %s37_s25 = ssub.s32 %s1392_s18, %s1603_s19  ;;  %p47_p8 = scmp.ne.s32.totalorder %s1388_s17, %s1384_s16 }
  0x6e   : > { %p38_p4 = scmp.eq.s32.totalorder %s37_s25, 0  ;;  %p48_p13 = scmp.eq.s32.totalorder %s1392_s18, 0 }
  0x6f   : > { %p1121_p6 = scmp.lt.s32.totalorder %s1392_s18, 2  ;;  %p1824_p3 = scmp.eq.s32.totalorder %s1484_s8, 1 }
  0x70   : > { %s1613_s21 = scalar_select %p38_p4, %s1388_s17, %s40_s15  }
  0x71   : > { %p49_p10 = por %p48_p13, %p47_p8  ;;  %p1617_p5 = por %p1824_p3, %p47_p8 }
  0x72   : > { %s353_s13 = sand.u32 1, %s1388_s17   ;;  %s929_s14 = sshll.u32 %s1392_s18, 7 }
  0x73   : > { %s1825_s12 = scalar_select %p1617_p5, 1, 0 }
  0x74   : > { %s1623_s29 = sshll.u32 %s353_s13, 3  ;;  %s1628_s23 = scalar_lea.hbm %s1793_s0, %s929_s14 }
  0x75   : > { %s357_s26 = scalar_lea.vmem [#allocation3], %s1623_s29  ;;  %p1631_p11 = pnand %p1121_p6, %p49_p10 }
  0x76   : > { %s364_s28 = sshll.u32 %s357_s26, 4  ;;  %s1640_s25 = scalar_lea.hbm %s1794_s1, %s929_s14  ;;  %s1635_s28 = int_to_ptr.vmem [resolvable:$true] %s364_s28 }
  0x77   : > { %s354_s15 = scalar_lea.sflag [#allocation4], %s353_s13  ;;  %s1254_s30 = scalar_lea.hbm %s1628_s23, 128 }
  0x78   : > { %p1255_p7 = scmp.ne.s32.totalorder %s1628_s23, %s1254_s30  ;;  %p1256_p9 = pneg %p1631_p11 }
  0x79   : > { %s1259_s2 = scalar_lea.hbm %s1793_s0, 256  ;;  %p1260_p1 = scmp.lt.u32.totalorder %s1628_s23, %s1793_s0 }
  0x7a   : > { %p1257_p12 = pnand %p1256_p9, %p1255_p7  ;;  %p1261_p2 = scmp.lt.u32.totalorder %s1259_s2, %s1254_s30 }
  0x7b   : > { %p1263_p8 = scmp.lt.u32.totalorder %s1254_s30, %s1628_s23 }
  0x7c   : > { %p1258_p0 = pneg %p1257_p12  ;;  %p1262_p4 = por %p1261_p2, %p1260_p1 }
  0x7e   : > { %p1264_p13 = por %p1263_p8, %p1262_p4 }
  0x80   : > { %p1265_p6 = pnand %p1264_p13, %p1258_p0 }
  0x82   : > { %1268 = shalt.err (!%p1265_p6)
}
  0x83   : > { %s1269_s13 = scalar_lea.vmem %s1635_s28, 128  ;;  %s1399_s14 = smov [#allocation3]  }
  0x84   : > { %p1270_p10 = scmp.ne.s32.totalorder %s1635_s28, %s1269_s13  ;;  %s1274_s27 = sshll.u32 %s1399_s14, 4  ;;  %s1275_s27 = int_to_ptr.vmem [resolvable:$false] %s1274_s27 }
  0x85   : > { %s1276_s3 = scalar_lea.vmem %s1275_s27, 256  ;;  %p1277_p12 = scmp.lt.s32.totalorder %s1635_s28, %s1275_s27 }
  0x86   : > { %p1272_p3 = pnand %p1270_p10, %p1256_p9  ;;  %p1278_p1 = scmp.lt.s32.totalorder %s1276_s3, %s1269_s13 }
  0x88   : > { %p1273_p7 = pneg %p1272_p3  ;;  %p1279_p2 = por %p1278_p1, %p1277_p12 }
  0x8a   : > { %p1280_p4 = pnand %p1279_p2, %p1273_p7 }
  0x8c   : > { %1283 = shalt.err (!%p1280_p4)
}
  0x8d   : > { %1110 = dma.hbm_to_vmem [thread:$0]  (!%p1631_p11), %s1628_s23, 128, %s1635_s28, %s354_s15  }
  0x8e   : > { %s371_s2 = sand.u32 1, %s1392_s18   ;;  %s375_s5 = scalar_lea.vmem [#allocation6], %s1623_s29 }
  0x8f   : > { %s382_s10 = sshll.u32 %s375_s5, 4  ;;  %s372_s30 = scalar_lea.sflag [#allocation7], %s371_s2  ;;  %s383_s10 = int_to_ptr.vmem [resolvable:$true] %s382_s10 }
  0x90   : > { %s1284_s11 = scalar_lea.hbm %s1640_s25, 128  ;;  %s1289_s14 = scalar_lea.hbm %s1794_s1, 256 }
  0x91   : > { %p1285_p0 = scmp.ne.s32.totalorder %s1640_s25, %s1284_s11  ;;  %p1290_p6 = scmp.lt.u32.totalorder %s1640_s25, %s1794_s1 }
  0x92   : > { %p1291_p10 = scmp.lt.u32.totalorder %s1289_s14, %s1284_s11  ;;  %p1293_p7 = scmp.lt.u32.totalorder %s1284_s11, %s1640_s25 }
  0x93   : > { %p1287_p8 = pnand %p1285_p0, %p1256_p9 }
  0x94   : > { %p1292_p3 = por %p1291_p10, %p1290_p6 }
  0x95   : > { %p1288_p13 = pneg %p1287_p8 }
  0x96   : > { %p1294_p12 = por %p1293_p7, %p1292_p3 }
  0x98   : > { %p1295_p1 = pnand %p1294_p12, %p1288_p13 }
  0x9a   : > { %1298 = shalt.err (!%p1295_p1)
}
  0x9b   : > { %s1299_s29 = scalar_lea.vmem %s383_s10, 128  ;;  %s1400_s23 = smov [#allocation6]  }
  0x9c   : > { %p1300_p2 = scmp.ne.s32.totalorder %s383_s10, %s1299_s29  ;;  %s1304_s28 = sshll.u32 %s1400_s23, 4  ;;  %s1305_s28 = int_to_ptr.vmem [resolvable:$false] %s1304_s28 }
  0x9d   : > { %s1306_s15 = scalar_lea.vmem %s1305_s28, 256  ;;  %p1307_p8 = scmp.lt.s32.totalorder %s383_s10, %s1305_s28 }
  0x9e   : > { %p1302_p4 = pnand %p1300_p2, %p1256_p9  ;;  %p1308_p5 = scmp.lt.s32.totalorder %s1306_s15, %s1299_s29 }
  0xa0   : > { %p1303_p0 = pneg %p1302_p4  ;;  %p1309_p6 = por %p1308_p5, %p1307_p8 }
  0xa2   : > { %p1310_p10 = pnand %p1309_p6, %p1303_p0 }
  0xa4   : > { %1313 = shalt.err (!%p1310_p10)
}
  0xa5   : > { %1113 = dma.hbm_to_vmem [thread:$0]  (!%p1631_p11), %s1640_s25, 128, %s383_s10, %s372_s30  }
  0xa6   : > { %p1827_p13 = scmp.ne.s32.totalorder %s1818_s22, 0 }
  0xa7   : > { %s1691_s2 = sand.u32 (!%p1827_p13), 1, %s1384_s16   ;;  %p1828_p5 = scmp.ne.s32.totalorder (!%p1827_p13), %s1815_s20, 0 }
  0xa8   : > { %391 = sbr.rel (%p1827_p13) target bundleno = 815 (0x32f), region = 56  ;;  %s1694_s5 = sshll.u32 (!%p1827_p13), %s1691_s2, 3 }
  0xa9   : > { %s394_s11 = scalar_lea.sflag (!%p1827_p13), [#allocation4], %s1691_s2  ;;  %s397_s26 = scalar_lea.vmem (!%p1827_p13), [#allocation3], %s1694_s5 }
  0xaf   : > { %1359 = dma.done.wait (%p1828_p5), %s394_s11, 128  }
  0xb0   : > { %1361 = vsyncadd (%p1828_p5), %s394_s11, 4294967168  ;;  %s402_s22 = sand.u32 1, %s1484_s8   ;;  %s406_s25 = scalar_lea.vmem [#allocation6], %s1694_s5 }
  0xb1   : > { %s403_s24 = scalar_lea.sflag [#allocation7], %s402_s22 }
  0xb2   : > { %1363 = dma.done.wait (%p1828_p5), %s403_s24, 128  }
  0xb3   : > { %1365 = vsyncadd (%p1828_p5), %s403_s24, 4294967168  ;;  %p1829_p11 = scmp.eq.s32.totalorder %s1484_s8, 0 }
  0xb5   : > { %1367 = dma.done.wait (%p1829_p11), [#allocation7], 768   ;;  %p1830_p9 = pmov %p1829_p11 }
  0xb7   : > { %1369 = vsyncadd (%p1830_p9), [#allocation7], 4294966528  ;;  %p1831_p3 = pmov %p1830_p9 }
  0xb9   : > { %1371 = dma.done.wait (%p1831_p3), [#allocation10], 2560   ;;  %p1832_p7 = pmov %p1831_p3 }
  0xba   : > { %v1401_v1 = vmov 0.0|0.0   ;;  %vm1402_vm0 = vmmov 0   ;;  %v1403_v2 = vmov 0.0   ;;  %v476_v3 = vld [vmem:[#allocation9] sm:$0xff]  ;;  %v477_v4 = vld [vmem:[#allocation9 + $0x8] sm:$0xff]  ;;  %v478_v5 = vld [vmem:[#allocation9 + $0x10] sm:$0xff] }
  0xbb   : > { %1373 = vsyncadd (%p1832_p7), [#allocation10], 4294964736  ;;  %1040 = vmatprep.subr.bf16.mxu1 %v1401_v1  ;;  %987 = vmatprep.mubr.msk.f32.mxu1 %vm1402_vm0, %v1403_v2  ;;  %v1041_v6 = vpack.c.bf16 %v477_v4, %v476_v3  ;;  %v479_v7 = vld [vmem:[#allocation9 + $0x18] sm:$0xff]  ;;  %v469_v9 = vld [vmem:[#allocation8] sm:$0xff]  ;;  %vm480_vm1 = vcmask 261120   ;;  %vm554_vm2 = vcmask 392192  }
  0xbc   : > { %1055 = vmatprep.subr.bf16.mxu0 %v1401_v1  ;;  %1037 = vmatprep.mubr.msk.f32.mxu0 %vm1402_vm0, %v1403_v2  ;;  %v1044_v8 = vpack.c.bf16 %v479_v7, %v478_v5  ;;  %v470_v10 = vld [vmem:[#allocation8 + $0x8] sm:$0xff]  ;;  %v636_v11 = vld [vmem:[#allocation11] sm:$0xff]  ;;  %v637_v12 = vld [vmem:[#allocation11 + $0x8] sm:$0xff]  ;;  %s457_s30 = scalar_lea.vmem [#allocation12], %s1694_s5  ;;  %s947_s29 = sshll.u32 %s1484_s8, 7 }
  0xbd   : > { %1042 = vmatpush3.bf16.msra.mxu1 %v1041_v6  ;;  %v1056_v13 = vpack.c.bf16 %v637_v12, %v636_v11  ;;  %v638_v14 = vld [vmem:[#allocation11 + $0x10] sm:$0xff]  ;;  %v639_v15 = vld [vmem:[#allocation11 + $0x18] sm:$0xff]  ;;  %v1047_v17 = vpack.c.bf16 %v470_v10, %v469_v9  ;;  %v471_v18 = vld [vmem:[#allocation8 + $0x10] sm:$0xff]  ;;  %s774_s23 = sshll.u32 %s457_s30, 4  ;;  %s1750_s5 = scalar_lea.hbm %s1802_s9, %s947_s29  ;;  %s775_s23 = int_to_ptr.vmem [resolvable:$true] %s774_s23 }
  0xbe   : > { %1043 = vmatprep.subr.bf16.mxu1 %v1401_v1  ;;  %v475_v16 = vld [vmem:[%s397_s26] sm:$0xff]  ;;  %v472_v19 = vld [vmem:[#allocation8 + $0x18] sm:$0xff]  ;;  %v1059_v20 = vpack.c.bf16 %v639_v15, %v638_v14  ;;  %v640_v21 = vld [vmem:[#allocation11 + $0x20] sm:$0xff]  ;;  %s757_s11 = scalar_lea.sflag [#allocation5], %s1691_s2  ;;  %s1314_s26 = scalar_lea.vmem %s775_s23, 128 }
  0xbf   : > { %1057 = vmatpush3.bf16.msra.mxu0 %v1056_v13  ;;  %v641_v22 = vld [vmem:[#allocation11 + $0x28] sm:$0xff]  ;;  %v1050_v23 = vpack.c.bf16 %v472_v19, %v471_v18  ;;  %v473_v24 = vld [vmem:[#allocation8 + $0x20] sm:$0xff]  ;;  %v474_v25 = vld [vmem:[#allocation8 + $0x28] sm:$0xff]  ;;  %p1315_p12 = scmp.ne.s32.totalorder %s775_s23, %s1314_s26  ;;  %p1833_p1 = scmp.ne.s32.totalorder %s1825_s12, 0 }
  0xc0   : > { %1058 = vmatprep.subr.bf16.mxu0 %v1401_v1  ;;  %v1062_v26 = vpack.c.bf16 %v641_v22, %v640_v21  ;;  %v642_v27 = vld [vmem:[#allocation11 + $0x30] sm:$0xff]  ;;  %v643_v28 = vld [vmem:[#allocation11 + $0x38] sm:$0xff]  ;;  %v1053_v29 = vpack.c.bf16 %v474_v25, %v473_v24  ;;  %v468_v31 = vld [vmem:[%s406_s25] sm:$0xff]  ;;  %s1404_s22 = smov [#allocation12]  }
  0xc1   : > { %1045 = vmatpush3.bf16.msra.mxu1 %v1044_v8  ;;  %v1065_v30 = vpack.c.bf16 %v643_v28, %v642_v27  ;;  %v644_v32 = vld [vmem:[#allocation11 + $0x40] sm:$0xff]  ;;  %v645_v33 = vld [vmem:[#allocation11 + $0x48] sm:$0xff]  ;;  %v646_v35 = vld [vmem:[#allocation11 + $0x50] sm:$0xff]  ;;  %p1316_p2 = pnand %p1315_p12, %p1833_p1  ;;  %s1318_s24 = sshll.u32 %s1404_s22, 4  ;;  %s1319_s24 = int_to_ptr.vmem [resolvable:$false] %s1318_s24 }
  0xc2   : > { %1046 = vmatprep.subr.bf16.mxu1 %v1401_v1  ;;  %v1068_v34 = vpack.c.bf16 %v645_v33, %v644_v32  ;;  %v647_v36 = vld [vmem:[#allocation11 + $0x58] sm:$0xff]  ;;  %v648_v38 = vld [vmem:[#allocation11 + $0x60] sm:$0xff]  ;;  %v649_v39 = vld [vmem:[#allocation11 + $0x68] sm:$0xff]  ;;  %s1320_s25 = scalar_lea.vmem %s1319_s24, 256  ;;  %p1321_p0 = scmp.lt.s32.totalorder %s775_s23, %s1319_s24 }
  0xc3   : > { %1060 = vmatpush3.bf16.msra.mxu0 %v1059_v20  ;;  %v1071_v37 = vpack.c.bf16 %v647_v36, %v646_v35  ;;  %v1074_v40 = vpack.c.bf16 %v649_v39, %v648_v38  ;;  %v650_v41 = vld [vmem:[#allocation11 + $0x70] sm:$0xff]  ;;  %v651_v42 = vld [vmem:[#allocation11 + $0x78] sm:$0xff]  ;;  %v942_v47 = vld [vmem:[%s1797_s4] ss:$0 sm:$0xff]  ;;  %p1317_p4 = pneg %p1316_p2  ;;  %p1322_p8 = scmp.lt.s32.totalorder %s1320_s25, %s1314_s26 }
  0xc4   : > { %988 = vmatmul.mubr.msk.f32.vlgmr.msra.gmra.mrb[0].mxu1 %vm480_vm1, %v475_v16  ;;  %1061 = vmatprep.subr.bf16.mxu0 %v1401_v1  ;;  %v1077_v43 = vpack.c.bf16 %v651_v42, %v650_v41  ;;  %v943_v51 = vld [vmem:[%s1799_s6] ss:$0 sm:$0xff] }
  0xc5   : > { %1048 = vmatpush3.bf16.msra.mxu1 %v1047_v17  ;;  %1002 = vmatprep.mubr.msk.f32.mxu1 %vm1402_vm0, %v1403_v2  ;;  %v944_v55 = vld [vmem:[%s1800_s7] ss:$0 sm:$0xff]  ;;  %p1323_p6 = por %p1322_p8, %p1321_p0 }
  0xc6   : > { %1049 = vmatprep.subr.bf16.mxu1 %v1401_v1 }
  0xc7   : > { %1063 = vmatpush3.bf16.msra.mxu0 %v1062_v26  ;;  %p1324_p10 = pnand %p1323_p6, %p1317_p4 }
  0xc8   : > { %1064 = vmatprep.subr.bf16.mxu0 %v1401_v1 }
  0xc9   : > { %1051 = vmatpush3.bf16.msra.mxu1 %v1050_v23 }
  0xca   : > { %1052 = vmatprep.subr.bf16.mxu1 %v1401_v1 }
  0xcb   : > { %1066 = vmatpush3.bf16.msra.mxu0 %v1065_v30 }
  0xcc   : > { %1067 = vmatprep.subr.bf16.mxu0 %v1401_v1 }
  0xcd   : > { %1054 = vmatpush3.bf16.msra.mxu1 %v1053_v29 }
  0xcf   : > { %1069 = vmatpush3.bf16.msra.mxu0 %v1068_v34 }
  0xd0   : > { %1003 = vmatmul.mubr.msk.f32.vlgmr.msra.gmra.mrb[2].mxu1 %vm554_vm2, %v468_v31  ;;  %1070 = vmatprep.subr.bf16.mxu0 %v1401_v1 }
  0xd3   : > { %1072 = vmatpush3.bf16.msra.mxu0 %v1071_v37 }
  0xd4   : > { %1073 = vmatprep.subr.bf16.mxu0 %v1401_v1 }
  0xd7   : > { %1075 = vmatpush3.bf16.msra.mxu0 %v1074_v40 }
  0xd8   : > { %1076 = vmatprep.subr.bf16.mxu0 %v1401_v1 }
  0xdb   : > { %1078 = vmatpush3.bf16.msra.mxu0 %v1077_v43 }
 0x197   : > { %v550_v44 = vpop.f32.mrb[0].mxu1 }
 0x198   : > { %v989_v45 = vpop.f32.mrb[1].mxu1 }
 0x1a3   : > { %v624_v46 = vpop.f32.mrb[2].mxu1 }
 0x1a4   : > { %v625_v48 = vadd.f32 %v624_v46, %v550_v44  ;;  %v1004_v49 = vpop.f32.mrb[3].mxu1 }
 0x1a6   : > { %v635_v50 = vadd.f32 %v942_v47, %v625_v48 }
 0x1a8   : > { %1038 = vmatmul.mubr.f32.vlgmr.msra.gmra.mrb[0].mxu0 %v635_v50  ;;  %755 = vst [vmem:[%s457_s30] sm:$0xff] %v635_v50 }
 0x27b   : > { %v725_v52 = vpop.f32.mrb[0].mxu0 }
 0x27c   : > { %v726_v53 = vadd.f32 %v943_v51, %v725_v52  ;;  %v1039_v54 = vpop.f32.mrb[1].mxu0 }
 0x27e   : > { %v729_v56 = vmax.f32 %v726_v53, 0.0 }
 0x280   : > { %v737_v57 = vmul.f32 %v944_v55, %v729_v56 }
 0x282   : > { %738 = vadd.xlane.f32.xlu0 %v737_v57 }
 0x283   : > { %1327 = shalt.err (!%p1324_p10)
}
 0x284   : > { %s1328_s2 = scalar_lea.hbm %s1750_s5, 128  ;;  %s1332_s30 = scalar_lea.hbm %s1802_s9, 256 }
 0x285   : > { %p1329_p13 = scmp.ne.s32.totalorder %s1750_s5, %s1328_s2  ;;  %p1333_p9 = scmp.lt.u32.totalorder %s1750_s5, %s1802_s9 }
 0x286   : > { %p1334_p3 = scmp.lt.u32.totalorder %s1332_s30, %s1328_s2  ;;  %p1336_p12 = scmp.lt.u32.totalorder %s1328_s2, %s1750_s5 }
 0x287   : > { %p1330_p5 = pnand %p1329_p13, %p1833_p1 }
 0x288   : > { %p1335_p7 = por %p1334_p3, %p1333_p9 }
 0x289   : > { %p1331_p11 = pneg %p1330_p5 }
 0x28a   : > { %p1337_p2 = por %p1336_p12, %p1335_p7 }
 0x28c   : > { %p1338_p4 = pnand %p1337_p2, %p1331_p11 }
 0x28e   : > { %1341 = shalt.err (!%p1338_p4)
}
 0x28f   : > { %1095 = dma.vmem_to_hbm [thread:$0]  (%p1833_p1), %s775_s23, 128, %s1750_s5, %s757_s11   ;;  %v945_v58 = vld [vmem:[#allocation2] ss:$0 sm:$0xff]  ;;  %vm753_vm3 = vcmask 7168  }
 0x290   : > { %p464_p0 = scmp.lt.s32.totalorder %s1484_s8, 1  ;;  %s1834_s28 = sld [smem:[#allocation23_spill]] }
 0x292   : > { %s1844_s8 = smov (!%p464_p0, %s1484_s8), 1 }
 0x293   : > { %s939_s27 = sshll.u32 %s1844_s8, 3 }
 0x296   : > { %s467_s12 = scalar_lea.vmem %s1834_s28, %s939_s27 }
 0x30f   : > { %v739_v59 = vpop.xlane.xlu0 %738 }
 0x310   : > { %v747_v60 = vadd.f32 %v945_v58, %v739_v59 }
 0x312   : > { %v748_v61 = vsub.f32 0.0, %v747_v60 }
 0x314   : > { %v749_v62 = vmul.f32 1.442695, %v748_v61 }
 0x316   : > { %1166 = vpow2.f32 %v749_v62 }
 0x320   : > { %v1167_v63 = vpop.eup %1166 }
 0x321   : > { %v751_v0 = vadd.f32 1.0, %v1167_v63 }
 0x323   : > { %1168 = vrcp.f32 %v751_v0 }
 0x32d   : > { %v1169_v1 = vpop.eup %1168 }
 0x32e   : > { %754 = vst.msk [vmem:[%s467_s12] sm:$0xff] %vm753_vm3, %v1169_v1 }
 0x32f PF: > { %s1835_s23 = sld [smem:[#allocation18_spill]]  ;;  %s1836_s15 = sld [smem:[#allocation19_spill]] }
 0x330   : > { %p1838_p8 = scmp.ge.s32.totalorder %s1392_s18, 2 }
 0x335   : > { %s789_s5 = sand.u32 1, %s1835_s23   ;;  %p1837_p1 = scmp.ne.s32.totalorder %s1836_s15, 0 }
 0x336   : > { %s790_s11 = scalar_lea.sflag [#allocation5], %s789_s5 }
 0x337   : > { %p1115_p6 = pnand %p1838_p8, %p1837_p1 }
 0x339   : > { %1375 = dma.done.wait (!%p1115_p6), %s790_s11, 128  }
 0x33a   : > { %1377 = vsyncadd (!%p1115_p6), %s790_s11, 4294967168  ;;  %p30_p10 = scmp.ge.s32.totalorder %s1603_s19, 4   ;;  %s1839_s15 = smov %s1384_s16 }
 0x33b   : > { %s1840_s16 = smov %s1388_s17  ;;  %s1841_s17 = smov %s1613_s21 }
 0x33c   : > { %s1842_s18 = smov %s1603_s19  ;;  %32 = sbr.rel (!%p30_p10) target bundleno = 13 (0xd), region = 138 }
 0x343   :  { %802 = vsyncpa [#allocation4], 1 }
 0x344   :  { %804 = vsyncpa [#allocation4 + $0x1], 1 }
 0x345   :  { %805 = vsyncpa [#allocation7], 1 }
 0x346   :  { %807 = vsyncpa [#allocation7 + $0x1], 1 }
 0x347   :  { %808 = vsyncpa [#allocation10], 1 }
 0x348   :  { %809 = vsyncpa [#allocation5], 1 }
 0x349   :  { %811 = vsyncpa [#allocation5 + $0x1], 1 }

</bundles_post_ra>
